<compile_context>
chip_gen: v6e
topology: v6e:2x2x1
jax: 0.10.0
libtpu: 0.0.40
codegen_flags: <defaults>
</compile_context>

<pallas_src>
import math

import jax
import jax.numpy as jnp
from jax.experimental import pallas as pl
from jax.experimental.pallas import tpu as pltpu


def _round_up(x, m):
    return ((x + m - 1) // m) * m


# V at or below this uses the one-hot MXU matmul gather; above it a true VMEM
# row gather keeps work O(1) per token (no (TB, V) intermediates, no O(V) MACs).
_ONE_HOT_MAX_V = 1024


# --------------------------------------------------------------------------- #
# Kernels
# --------------------------------------------------------------------------- #
def _embed_bias_resident_kernel(idx_ref, w_ref, b_ref, o_ref):
    """Blocked-token gather against a VMEM-resident table.

    idx_ref: (TB, 1) int32 indices for this token block
    w_ref:   (V, D)  full weight table (resident, constant block index)
    b_ref:   (1, D)  bias (resident)
    o_ref:   (TB, D) output tile
    """
    idx = idx_ref[...]                                  # (TB, 1) int32
    w = w_ref[...]                                      # (V, D)
    v = w.shape[0]

    if v <= _ONE_HOT_MAX_V:
        # One-hot gather on the otherwise-idle MXU.  The iota is (1, V) and the
        # compare broadcasts against idx (TB, 1): only the (TB, V) one-hot
        # itself is materialized.
        col = jax.lax.broadcasted_iota(jnp.int32, (1, v), 1)
        onehot = (col == idx).astype(w.dtype)           # (TB, V)
        gathered = jnp.dot(onehot, w, preferred_element_type=jnp.float32)
    else:
        # True VMEM gather: O(1) per token (indices clamp if out of range).
        gathered = jnp.take(w, idx[:, 0], axis=0).astype(jnp.float32)

    o_ref[...] = (gathered + b_ref[...].astype(jnp.float32)).astype(o_ref.dtype)


def _embed_bias_row_gather_kernel(idx_ref, w_ref, b_ref, o_ref):
    """Streamed HBM row gather: one gathered weight row per grid step.

    idx_ref: (N,) int32 scalar-prefetched indices (consumed by the index_maps)
    w_ref:   (1, D) the gathered weight row for this token
    b_ref:   (1, D) bias
    o_ref:   (1, D) output row
    """
    del idx_ref  # only used by the index_maps
    o_ref[...] = (w_ref[...].astype(jnp.float32)
                  + b_ref[...].astype(jnp.float32)).astype(o_ref.dtype)


# --------------------------------------------------------------------------- #
# pallas_call builders
# --------------------------------------------------------------------------- #
def _resident_call(idx2d, weight, bias2d, TB, num_blocks, vmem_limit,
                   single_buffer_table):
    V, D = weight.shape
    const_kwargs = {}
    if single_buffer_table:
        # Constant index_map -> the block never changes; one buffer is enough.
        const_kwargs = dict(pipeline_mode=pl.Buffered(1))

    grid_spec = pltpu.PrefetchScalarGridSpec(
        num_scalar_prefetch=0,
        grid=(num_blocks,),
        in_specs=[
            # per-block token indices
            pl.BlockSpec((TB, 1), lambda i: (i, 0)),
            # whole weight table, constant block index -> VMEM-resident
            pl.BlockSpec((V, D), lambda i: (0, 0), **const_kwargs),
            # bias, constant block index -> resident
            pl.BlockSpec((1, D), lambda i: (0, 0), **const_kwargs),
        ],
        out_specs=pl.BlockSpec((TB, D), lambda i: (i, 0)),
    )
    return pl.pallas_call(
        _embed_bias_resident_kernel,
        out_shape=jax.ShapeDtypeStruct((num_blocks * TB, D), jnp.float32),
        grid_spec=grid_spec,
        compiler_params=pltpu.CompilerParams(
            dimension_semantics=("parallel",),   # independent blocks -> 2 TCs on v7x
            vmem_limit_bytes=int(vmem_limit),
        ),
    )(idx2d, weight, bias2d)


def _row_gather_call(flat_idx, weight, bias2d, vmem_limit):
    V, D = weight.shape
    N = flat_idx.shape[0]
    grid_spec = pltpu.PrefetchScalarGridSpec(
        num_scalar_prefetch=1,          # indices land in SMEM, drive the index_map
        grid=(N,),
        in_specs=[
            # block height 1 -> block index == row index -> gathered weight row
            pl.BlockSpec((1, D), lambda i, idx_ref: (idx_ref[i], 0)),
            pl.BlockSpec((1, D), lambda i, idx_ref: (0, 0)),
        ],
        out_specs=pl.BlockSpec((1, D), lambda i, idx_ref: (i, 0)),
    )
    return pl.pallas_call(
        _embed_bias_row_gather_kernel,
        out_shape=jax.ShapeDtypeStruct((N, D), jnp.float32),
        grid_spec=grid_spec,
        compiler_params=pltpu.CompilerParams(
            dimension_semantics=("arbitrary",),
            vmem_limit_bytes=int(vmem_limit),
        ),
    )(flat_idx, weight, bias2d)


# --------------------------------------------------------------------------- #
# Wrapper
# --------------------------------------------------------------------------- #
def embedding_with_bias(indices, weight, bias, *, block_tokens=1024,
                        force_path=None):
    """indices: (B, L) int; weight: (V, D); bias: (D,) -> (B*L, D) float32."""
    B, L = indices.shape
    V, D = weight.shape
    N = B * L

    flat_idx = indices.reshape(-1).astype(jnp.int32)
    bias2d = bias.reshape(1, D).astype(jnp.float32)

    # ---- hardware VMEM capacity (per TensorCore) ----
    try:
        vmem_cap = int(pltpu.get_tpu_info().vmem_capacity_bytes)
    except Exception:
        vmem_cap = 64 * 1024 * 1024        # conservative (v7x per-TC) default
    vmem_clamp = int(0.90 * vmem_cap)

    # ---- token block size: multiple of 8, >= 2 blocks when N > 8 ----
    half = -(-N // 2)
    TB = min(block_tokens, _round_up(max(half, 8), 8))
    TB = max(8, _round_up(TB, 8))
    N_pad = _round_up(N, TB)
    num_blocks = N_pad // TB

    # ---- VMEM estimates (table + gather intermediates + pipelined I/O) ----
    itemsize = jnp.dtype(weight.dtype).itemsize
    table_bytes = V * D * itemsize
    if V <= _ONE_HOT_MAX_V:
        interm_bytes = TB * V * 4 + V * 4 + TB * D * 4   # one-hot, iota row, f32 acc
    else:
        interm_bytes = 2 * TB * D * 4                    # gathered rows + f32 acc
    io_bytes = 2 * TB * 4 + 2 * TB * D * 4 + 2 * D * 4   # dbl-buffered idx/out + bias
    slack = 2 * 1024 * 1024
    est_single = table_bytes + interm_bytes + io_bytes + slack
    est_double = 2 * table_bytes + interm_bytes + io_bytes + slack

    # ---- dispatch: resident table vs streamed HBM row gather ----
    if force_path == "hbm_gather":
        use_gather = True
    elif force_path == "resident":
        use_gather = False
    else:
        # gather if the table cannot sit in VMEM, or if the output traffic is
        # much smaller than one full table copy (short sequences, huge vocab).
        use_gather = (est_single > vmem_clamp) or (8 * N < V)

    if use_gather:
        gather_limit = min(vmem_clamp, 32 * 1024 * 1024)
        return _row_gather_call(flat_idx, weight, bias2d, gather_limit)

    # ---- resident-table path ----
    if N_pad != N:
        flat_idx = jnp.pad(flat_idx, (0, N_pad - N))     # index 0 is always valid
    idx2d = flat_idx.reshape(N_pad, 1)

    vmem_limit = min(vmem_clamp, max(32 * 1024 * 1024, est_single))
    try:
        out = _resident_call(idx2d, weight, bias2d, TB, num_blocks,
                             vmem_limit, single_buffer_table=True)
        out = jax.block_until_ready(out)
    except Exception:
        # pl.Buffered(1) unavailable on this jax version: retry double-buffered
        # if it fits, otherwise stream the rows straight from HBM.
        if est_double <= vmem_clamp:
            vmem_limit2 = min(vmem_clamp, max(32 * 1024 * 1024, est_double))
            out = _resident_call(idx2d, weight, bias2d, TB, num_blocks,
                                 vmem_limit2, single_buffer_table=False)
            out = jax.block_until_ready(out)
        else:
            gather_limit = min(vmem_clamp, 32 * 1024 * 1024)
            return _row_gather_call(indices.reshape(-1).astype(jnp.int32),
                                    weight, bias2d, gather_limit)

    return out[:N]


# --------------------------------------------------------------------------- #
# Demo / self-check
# --------------------------------------------------------------------------- #
if __name__ == "__main__":
    # Deterministic parameter init mirroring reset_parameters():
    #   weight ~ Normal(0, 1), bias ~ Uniform(-1/sqrt(D), 1/sqrt(D))
    input_dim = 16    # vocabulary size
    output_dim = 32   # embedding size
    B, L = 2, 8       # batch of index rows, row length

    key = jax.random.PRNGKey(0)
    k_w, k_b, k_idx = jax.random.split(key, 3)

    weight = jax.random.normal(k_w, (input_dim, output_dim), dtype=jnp.float32)
    stdv = 1.0 / math.sqrt(output_dim)
    bias = jax.random.uniform(
        k_b, (output_dim,), dtype=jnp.float32, minval=-stdv, maxval=stdv
    )
    indices = jax.random.randint(k_idx, (B, L), 0, input_dim, dtype=jnp.int32)

    ref = weight[indices.reshape(-1)] + bias[None, :]

    # Main (resident-table) path.
    out = embedding_with_bias(indices, weight, bias)
    out = jax.block_until_ready(out)
    assert out.shape == (B * L, output_dim), out.shape
    assert jnp.allclose(out, ref, atol=1e-5), "resident path mismatch vs reference"

    # Streamed HBM row-gather fallback (the path huge vocabularies take,
    # especially on v7x's 64 MiB/TC VMEM).
    out2 = jax.block_until_ready(
        embedding_with_bias(indices, weight, bias, force_path="hbm_gather"))
    assert out2.shape == (B * L, output_dim), out2.shape
    assert jnp.allclose(out2, ref, atol=1e-5), "row-gather path mismatch vs reference"

    print("KERNEL_OK")
</pallas_src>

<mosaic_0001>
module attributes {stable_mosaic.version = 11 : i64} {
  func.func @_embed_bias_resident_kernel(%arg0: i32, %arg1: memref<8x1xi32, #tpu.memory_space<vmem>>, %arg2: memref<16x32xf32, #tpu.memory_space<vmem>>, %arg3: memref<1x32xf32, #tpu.memory_space<vmem>>, %arg4: memref<8x32xf32, #tpu.memory_space<vmem>>) attributes {dimension_semantics = [#tpu.dimension_semantics<parallel>], iteration_bounds = array<i64: 2>, scalar_prefetch = 0 : i64, scratch_operands = 0 : i64, tpu.core_type = #tpu.core_type<tc>, window_params = [{transform_indices = @transform_0, window_bounds = array<i64: 8, 1>}, {pipeline_mode = #tpu.pipeline_mode<synchronous>, transform_indices = @transform_1, window_bounds = array<i64: 16, 32>}, {pipeline_mode = #tpu.pipeline_mode<synchronous>, transform_indices = @transform_2, window_bounds = array<i64: 1, 32>}, {transform_indices = @transform_3, window_bounds = array<i64: 8, 32>}]} {
    %c0 = arith.constant 0 : index
    %c0_0 = arith.constant 0 : index
    %0 = vector.load %arg1[%c0, %c0_0] : memref<8x1xi32, #tpu.memory_space<vmem>>, vector<8x1xi32>
    %c0_1 = arith.constant 0 : index
    %c0_2 = arith.constant 0 : index
    %1 = vector.load %arg2[%c0_1, %c0_2] : memref<16x32xf32, #tpu.memory_space<vmem>>, vector<16x32xf32>
    %2 = tpu.iota {dimensions = array<i32: 1>} : vector<1x16xi32>
    %3 = vector.broadcast %2 : vector<1x16xi32> to vector<8x16xi32>
    %4 = vector.broadcast %0 : vector<8x1xi32> to vector<8x16xi32>
    %5 = arith.cmpi eq, %3, %4 : vector<8x16xi32>
    %6 = arith.extui %5 : vector<8x16xi1> to vector<8x16xi32>
    %7 = arith.sitofp %6 : vector<8x16xi32> to vector<8x16xf32>
    %cst = arith.constant dense<0.000000e+00> : vector<8x32xf32>
    %8 = tpu.matmul %7, %1, %cst {dimension_numbers = #tpu.dot_dimension_numbers<[1], [0], [0], [1], [0, 0, 1, 1], [], []>} : vector<8x16xf32>, vector<16x32xf32>, vector<8x32xf32> -> vector<8x32xf32>
    %c0_3 = arith.constant 0 : index
    %c0_4 = arith.constant 0 : index
    %9 = vector.load %arg3[%c0_3, %c0_4] : memref<1x32xf32, #tpu.memory_space<vmem>>, vector<1x32xf32>
    %10 = vector.broadcast %9 : vector<1x32xf32> to vector<8x32xf32>
    %11 = arith.addf %8, %10 : vector<8x32xf32>
    %c0_5 = arith.constant 0 : index
    %c0_6 = arith.constant 0 : index
    %12 = vector.load %arg4[%c0_5, %c0_6] : memref<8x32xf32, #tpu.memory_space<vmem>>, vector<8x32xf32>
    tpu.vector_store %arg4[%c0_5, %c0_6], %11 {strides = array<i32>} : memref<8x32xf32, #tpu.memory_space<vmem>>, vector<8x32xf32>,
    return
  }
  func.func @transform_0(%arg0: i32) -> (i32, i32) {
    %c0_i32 = arith.constant 0 : i32
    %c0_i32_0 = arith.constant 0 : i32
    return %arg0, %c0_i32 : i32, i32
  }
  func.func @transform_1(%arg0: i32) -> (i32, i32) {
    %c0_i32 = arith.constant 0 : i32
    %c0_i32_0 = arith.constant 0 : i32
    %c0_i32_1 = arith.constant 0 : i32
    return %c0_i32, %c0_i32_0 : i32, i32
  }
  func.func @transform_2(%arg0: i32) -> (i32, i32) {
    %c0_i32 = arith.constant 0 : i32
    %c0_i32_0 = arith.constant 0 : i32
    %c0_i32_1 = arith.constant 0 : i32
    return %c0_i32, %c0_i32_0 : i32, i32
  }
  func.func @transform_3(%arg0: i32) -> (i32, i32) {
    %c0_i32 = arith.constant 0 : i32
    %c0_i32_0 = arith.constant 0 : i32
    return %arg0, %c0_i32 : i32, i32
  }
}

module attributes {stable_mosaic.version = 11 : i64} {
  func.func @_embed_bias_resident_kernel(%arg0: i32, %arg1: memref<8x1xi32, #tpu.memory_space<vmem>>, %arg2: memref<16x32xf32, #tpu.memory_space<vmem>>, %arg3: memref<1x32xf32, #tpu.memory_space<vmem>>, %arg4: memref<8x32xf32, #tpu.memory_space<vmem>>) attributes {dimension_semantics = [#tpu.dimension_semantics<parallel>], iteration_bounds = array<i64: 2>, scalar_prefetch = 0 : i64, scratch_operands = 0 : i64, tpu.core_type = #tpu.core_type<tc>, window_params = [{transform_indices = @transform_0, window_bounds = array<i64: 8, 1>}, {pipeline_mode = #tpu.pipeline_mode<synchronous>, transform_indices = @transform_1, window_bounds = array<i64: 16, 32>}, {pipeline_mode = #tpu.pipeline_mode<synchronous>, transform_indices = @transform_2, window_bounds = array<i64: 1, 32>}, {transform_indices = @transform_3, window_bounds = array<i64: 8, 32>}]} {
    %c0 = arith.constant 0 : index
    %c0_0 = arith.constant 0 : index
    %0 = vector.load %arg1[%c0, %c0_0] : memref<8x1xi32, #tpu.memory_space<vmem>>, vector<8x1xi32>
    %c0_1 = arith.constant 0 : index
    %c0_2 = arith.constant 0 : index
    %1 = vector.load %arg2[%c0_1, %c0_2] : memref<16x32xf32, #tpu.memory_space<vmem>>, vector<16x32xf32>
    %2 = tpu.iota {dimensions = array<i32: 1>} : vector<1x16xi32>
    %3 = vector.broadcast %2 : vector<1x16xi32> to vector<8x16xi32>
    %4 = vector.broadcast %0 : vector<8x1xi32> to vector<8x16xi32>
    %5 = arith.cmpi eq, %3, %4 : vector<8x16xi32>
    %6 = arith.extui %5 : vector<8x16xi1> to vector<8x16xi32>
    %7 = arith.sitofp %6 : vector<8x16xi32> to vector<8x16xf32>
    %cst = arith.constant dense<0.000000e+00> : vector<8x32xf32>
    %8 = tpu.matmul %7, %1, %cst {dimension_numbers = #tpu.dot_dimension_numbers<[1], [0], [0], [1], [0, 0, 1, 1], [], []>} : vector<8x16xf32>, vector<16x32xf32>, vector<8x32xf32> -> vector<8x32xf32>
    %c0_3 = arith.constant 0 : index
    %c0_4 = arith.constant 0 : index
    %9 = vector.load %arg3[%c0_3, %c0_4] : memref<1x32xf32, #tpu.memory_space<vmem>>, vector<1x32xf32>
    %10 = vector.broadcast %9 : vector<1x32xf32> to vector<8x32xf32>
    %11 = arith.addf %8, %10 : vector<8x32xf32>
    %c0_5 = arith.constant 0 : index
    %c0_6 = arith.constant 0 : index
    %12 = vector.load %arg4[%c0_5, %c0_6] : memref<8x32xf32, #tpu.memory_space<vmem>>, vector<8x32xf32>
    tpu.vector_store %arg4[%c0_5, %c0_6], %11 {strides = array<i32>} : memref<8x32xf32, #tpu.memory_space<vmem>>, vector<8x32xf32>,
    return
  }
  func.func @transform_0(%arg0: i32) -> (i32, i32) {
    %c0_i32 = arith.constant 0 : i32
    %c0_i32_0 = arith.constant 0 : i32
    return %arg0, %c0_i32 : i32, i32
  }
  func.func @transform_1(%arg0: i32) -> (i32, i32) {
    %c0_i32 = arith.constant 0 : i32
    %c0_i32_0 = arith.constant 0 : i32
    %c0_i32_1 = arith.constant 0 : i32
    return %c0_i32, %c0_i32_0 : i32, i32
  }
  func.func @transform_2(%arg0: i32) -> (i32, i32) {
    %c0_i32 = arith.constant 0 : i32
    %c0_i32_0 = arith.constant 0 : i32
    %c0_i32_1 = arith.constant 0 : i32
    return %c0_i32, %c0_i32_0 : i32, i32
  }
  func.func @transform_3(%arg0: i32) -> (i32, i32) {
    %c0_i32 = arith.constant 0 : i32
    %c0_i32_0 = arith.constant 0 : i32
    return %arg0, %c0_i32 : i32, i32
  }
}

</mosaic_0001>

<bundles_post_ra>
// kernel: tpu_custom_call.1
= control target key start
LH: loop header
LB: loop body
LE: loop exit
PB: predicated region body
PF: predicated region fallthrough
CT: control target
= control target key end

     0   :  { %8 = vsyncpa [#allocation3], 0  ;;  %s587_s0 = inlined_call_operand.vmem [shape: s32[16,1], index: 0, kind: input, shape index: {}]   ;;  %s588_s1 = inlined_call_operand.vmem [shape: f32[16,32], index: 1, kind: input, shape index: {}]   ;;  %s589_s2 = inlined_call_operand.vmem [shape: f32[1,32], index: 2, kind: input, shape index: {}]   ;;  %s590_s3 = inlined_call_operand.hbm [shape: f32[16,32], index: 3, kind: output, shape index: {}]  }
   0x1   :  { %10 = vsyncpa [#allocation3 + $0x1], 0  ;;  %s485_s12 = smov 0   ;;  %s487_s13 = smov 0  }
   0x2   :  { %s489_s14 = smov 0   ;;  %s491_s15 = smov 0  }
   0x3 LB: > { %s506_s16 = sadd.s32 4294967295, %s459_s15   ;;  %s333_s17 = sadd.s32 4294967294, %s459_s15   ;;  %s459_s15 = sphi %s491_s15, %s596_s15   ;;  %s455_s14 = sphi %s489_s14, %s595_s14   ;;  %s451_s13 = sphi %s487_s13, %s594_s13   ;;  %s447_s12 = sphi %s485_s12, %s593_s12  }
   0x4   : > { %s510_s18 = sadd.s32 1, %s459_s15   ;;  %s91_s19 = sadd.s32 1, %s455_s14 }
   0x5   : > { %s88_s20 = ssub.s32 %s459_s15, %s510_s18  ;;  %p101_p0 = scmp.ne.s32.totalorder %s455_s14, %s451_s13 }
   0x6   : > { %p89_p1 = scmp.eq.s32.totalorder %s88_s20, 0  ;;  %p102_p2 = scmp.eq.s32.totalorder %s506_s16, 1 }
   0x7   : > { %p107_p3 = scmp.ne.s32.totalorder %s451_s13, %s447_s12  ;;  %p108_p4 = scmp.eq.s32.totalorder %s333_s17, 1 }
   0x8   : > { %s521_s21 = scalar_select %p89_p1, %s455_s14, %s91_s19  }
   0x9   : > { %p523_p5 = por %p102_p2, %p101_p0  ;;  %p527_p6 = por %p108_p4, %p107_p3 }
   0xa   : > { %p336_p7 = scmp.ge.s32.totalorder %s459_s15, 1  ;;  %p139_p8 = scmp.lt.s32.totalorder %s459_s15, 3 }
   0xc   : > { %p140_p9 = pnand %p336_p7, %p139_p8 }
   0xd   : > { %p162_p10 = scmp.lt.s32.totalorder (!%p140_p9), %s506_s16, 1  ;;  %s159_s6 = sand.u32 (!%p140_p9), 1, %s451_s13  }
   0xe   : > { %143 = sbr.rel (%p140_p9) target bundleno = 358 (0x166), region = 32  ;;  %s337_s7 = sshll.u32 (!%p140_p9), %s159_s6, 3 }
   0xf   : > { %s343_s10 = sshll.u32 (!%p140_p9), %s506_s16, 7  ;;  %s161_s11 = scalar_lea.vmem (!%p140_p9), [#allocation2], %s337_s7 }
  0x10   : > { %s274_s17 = sshll.u32 (!%p140_p9), %s161_s11, 4  ;;  %s552_s24 = scalar_lea.hbm (!%p140_p9), %s590_s3, %s343_s10  ;;  %s275_s17 = int_to_ptr.vmem [resolvable:$true] %s274_s17 }
  0x11   : > { %s261_s25 = scalar_lea.sflag (!%p140_p9), [#allocation3], %s159_s6 }
  0x13   : > { %v168_v0 = vld [vmem:[%s588_s1 + $0x8] sm:$0xff]  ;;  %v461_v1 = vmov 0   ;;  %v462_v2 = vmov 0.0   ;;  %s163_s26 = scalar_select %p162_p10, %s506_s16, 1  ;;  %v167_v3 = vld [vmem:[%s588_s1] sm:$0xff]  ;;  %vm463_vm0 = vmmov 0   ;;  %v169_v5 = vlaneseq }
  0x14   : > { %398 = vset.pattern.permute.xlu0 %v461_v1  ;;  %349 = vmatprep.subr.mxu0 %v462_v2  ;;  %vm184_vm1 = vcmask 130048   ;;  %v340_v9 = vld [vmem:[%s589_s2] ss:$0 sm:$0xff]  ;;  %vm258_vm3 = vcmask 261120   ;;  %s464_s16 = smov [#allocation2]  }
  0x15   : > { %350 = vmatpush3.msra.mxu0 %v168_v0  ;;  %s338_s29 = sshll.u32 %s163_s26, 3  ;;  %353 = vmatprep.mubr.msk.f32.mxu0 %vm463_vm0, %v462_v2  ;;  %v170_v6 = vand.u32 127, %v169_v5  ;;  %s399_s26 = scalar_lea.vmem %s275_s17, 128 }
  0x16   : > { %351 = vmatprep.subr.mxu0 %v462_v2  ;;  %s165_s5 = scalar_lea.vmem %s587_s0, %s338_s29  ;;  %p400_p11 = scmp.ne.s32.totalorder %s275_s17, %s399_s26 }
  0x17   : > { %352 = vmatpush3.msra.mxu0 %v167_v3  ;;  %v166_v4 = vld [vmem:[%s165_s5] sm:$0xff]  ;;  %s403_s27 = sshll.u32 %s464_s16, 4  ;;  %s404_s27 = int_to_ptr.vmem [resolvable:$false] %s403_s27 }
  0x18   : > { %172 = vperm.xlu0 %398, %v166_v4   ;;  %p401_p12 = pnand %p400_p11, %p523_p5  ;;  %s405_s28 = scalar_lea.vmem %s404_s27, 256 }
  0x19   : > { %p406_p0 = scmp.lt.s32.totalorder %s275_s17, %s404_s27  ;;  %p407_p1 = scmp.lt.s32.totalorder %s405_s28, %s399_s26 }
  0x1a   : > { %p402_p13 = pneg %p401_p12 }
  0x1b   : > { %p408_p2 = por %p407_p1, %p406_p0 }
  0x1d   : > { %p409_p3 = pnand %p408_p2, %p402_p13 }
  0x93   : > { %v173_v7 = vpop.permute.xlu0 %172 }
  0x94   : > { %vm174_vm2 = vcmp.eq.s32.totalorder %v170_v6, %v173_v7 }
  0x95   : > { %v339_v8 = vsel %vm174_vm2, 1.0, %v462_v2 }
  0x96   : > { %354 = vmatmul.mubr.msk.f32.vlgmr.msra.gmra.mxu0 %vm184_vm1, %v339_v8 }
 0x156   : > { %v254_v10 = vpop.f32.mrf.mxu0 }
 0x157   : > { %v255_v11 = vadd.f32 %v340_v9, %v254_v10 }
 0x158   : > { %v355_v12 = vpop.f32.mrf.mxu0 }
 0x159   : > { %259 = vst.msk [vmem:[%s161_s11] sm:$0xff] %vm258_vm3, %v255_v11 }
 0x15a   : > { %412 = shalt.err (!%p409_p3)
}
 0x15b   : > { %s413_s29 = scalar_lea.hbm %s552_s24, 128  ;;  %s417_s5 = scalar_lea.hbm %s590_s3, 256 }
 0x15c   : > { %p414_p4 = scmp.ne.s32.totalorder %s552_s24, %s413_s29  ;;  %p418_p9 = scmp.lt.s32.totalorder %s552_s24, %s590_s3 }
 0x15d   : > { %p419_p10 = scmp.lt.s32.totalorder %s417_s5, %s413_s29 }
 0x15e   : > { %p415_p7 = pnand %p414_p4, %p523_p5 }
 0x15f   : > { %p420_p11 = por %p419_p10, %p418_p9 }
 0x160   : > { %p416_p8 = pneg %p415_p7 }
 0x162   : > { %p421_p12 = pnand %p420_p11, %p416_p8 }
 0x164   : > { %424 = shalt.err (!%p421_p12)
}
 0x165   : > { %356 = dma.vmem_to_hbm [thread:$0]  (%p523_p5), %s275_s17, 128, %s552_s24, %s261_s25  }
 0x166 PF: > { %p362_p13 = scmp.ge.s32.totalorder %s459_s15, 2  ;;  %s286_s8 = sand.u32 1, %s447_s12  }
 0x167   : > { %s287_s9 = scalar_lea.sflag [#allocation3], %s286_s8 }
 0x168   : > { %p359_p0 = pnand %p362_p13, %p527_p6 }
 0x16a   : > { %p360_p1 = pneg %p359_p0 }
 0x16c   : > { %442 = dma.done.wait (%p360_p1), %s287_s9, 128  }
 0x16d   : > { %444 = vsyncadd (%p360_p1), %s287_s9, 4294967168  ;;  %p13_p2 = scmp.ge.s32.totalorder %s510_s18, 4   ;;  %s593_s12 = smov %s451_s13 }
 0x16e   : > { %s594_s13 = smov %s455_s14  ;;  %s595_s14 = smov %s521_s21 }
 0x16f   : > { %s596_s15 = smov %s510_s18  ;;  %15 = sbr.rel (!%p13_p2) target bundleno = 3 (0x3), region = 67 }
 0x174   :  { %292 = vsyncpa [#allocation3], 1 }
 0x175   :  { %294 = vsyncpa [#allocation3 + $0x1], 1 }

// kernel: tpu_custom_call.1
= control target key start
LH: loop header
LB: loop body
LE: loop exit
PB: predicated region body
PF: predicated region fallthrough
CT: control target
= control target key end

     0   :  { %8 = vsyncpa [#allocation3], 0  ;;  %s587_s0 = inlined_call_operand.vmem [shape: s32[16,1], index: 0, kind: input, shape index: {}]   ;;  %s588_s1 = inlined_call_operand.vmem [shape: f32[16,32], index: 1, kind: input, shape index: {}]   ;;  %s589_s2 = inlined_call_operand.vmem [shape: f32[1,32], index: 2, kind: input, shape index: {}]   ;;  %s590_s3 = inlined_call_operand.hbm [shape: f32[16,32], index: 3, kind: output, shape index: {}]  }
   0x1   :  { %10 = vsyncpa [#allocation3 + $0x1], 0  ;;  %s485_s12 = smov 0   ;;  %s487_s13 = smov 0  }
   0x2   :  { %s489_s14 = smov 0   ;;  %s491_s15 = smov 0  }
   0x3 LB: > { %s506_s16 = sadd.s32 4294967295, %s459_s15   ;;  %s333_s17 = sadd.s32 4294967294, %s459_s15   ;;  %s459_s15 = sphi %s491_s15, %s596_s15   ;;  %s455_s14 = sphi %s489_s14, %s595_s14   ;;  %s451_s13 = sphi %s487_s13, %s594_s13   ;;  %s447_s12 = sphi %s485_s12, %s593_s12  }
   0x4   : > { %s510_s18 = sadd.s32 1, %s459_s15   ;;  %s91_s19 = sadd.s32 1, %s455_s14 }
   0x5   : > { %s88_s20 = ssub.s32 %s459_s15, %s510_s18  ;;  %p101_p0 = scmp.ne.s32.totalorder %s455_s14, %s451_s13 }
   0x6   : > { %p89_p1 = scmp.eq.s32.totalorder %s88_s20, 0  ;;  %p102_p2 = scmp.eq.s32.totalorder %s506_s16, 1 }
   0x7   : > { %p107_p3 = scmp.ne.s32.totalorder %s451_s13, %s447_s12  ;;  %p108_p4 = scmp.eq.s32.totalorder %s333_s17, 1 }
   0x8   : > { %s521_s21 = scalar_select %p89_p1, %s455_s14, %s91_s19  }
   0x9   : > { %p523_p5 = por %p102_p2, %p101_p0  ;;  %p527_p6 = por %p108_p4, %p107_p3 }
   0xa   : > { %p336_p7 = scmp.ge.s32.totalorder %s459_s15, 1  ;;  %p139_p8 = scmp.lt.s32.totalorder %s459_s15, 3 }
   0xc   : > { %p140_p9 = pnand %p336_p7, %p139_p8 }
   0xd   : > { %p162_p10 = scmp.lt.s32.totalorder (!%p140_p9), %s506_s16, 1  ;;  %s159_s6 = sand.u32 (!%p140_p9), 1, %s451_s13  }
   0xe   : > { %143 = sbr.rel (%p140_p9) target bundleno = 358 (0x166), region = 32  ;;  %s337_s7 = sshll.u32 (!%p140_p9), %s159_s6, 3 }
   0xf   : > { %s343_s10 = sshll.u32 (!%p140_p9), %s506_s16, 7  ;;  %s161_s11 = scalar_lea.vmem (!%p140_p9), [#allocation2], %s337_s7 }
  0x10   : > { %s274_s17 = sshll.u32 (!%p140_p9), %s161_s11, 4  ;;  %s552_s24 = scalar_lea.hbm (!%p140_p9), %s590_s3, %s343_s10  ;;  %s275_s17 = int_to_ptr.vmem [resolvable:$true] %s274_s17 }
  0x11   : > { %s261_s25 = scalar_lea.sflag (!%p140_p9), [#allocation3], %s159_s6 }
  0x13   : > { %v168_v0 = vld [vmem:[%s588_s1 + $0x8] sm:$0xff]  ;;  %v461_v1 = vmov 0   ;;  %v462_v2 = vmov 0.0   ;;  %s163_s26 = scalar_select %p162_p10, %s506_s16, 1  ;;  %v167_v3 = vld [vmem:[%s588_s1] sm:$0xff]  ;;  %vm463_vm0 = vmmov 0   ;;  %v169_v5 = vlaneseq }
  0x14   : > { %398 = vset.pattern.permute.xlu0 %v461_v1  ;;  %349 = vmatprep.subr.mxu0 %v462_v2  ;;  %vm184_vm1 = vcmask 130048   ;;  %v340_v9 = vld [vmem:[%s589_s2] ss:$0 sm:$0xff]  ;;  %vm258_vm3 = vcmask 261120   ;;  %s464_s16 = smov [#allocation2]  }
  0x15   : > { %350 = vmatpush3.msra.mxu0 %v168_v0  ;;  %s338_s29 = sshll.u32 %s163_s26, 3  ;;  %353 = vmatprep.mubr.msk.f32.mxu0 %vm463_vm0, %v462_v2  ;;  %v170_v6 = vand.u32 127, %v169_v5  ;;  %s399_s26 = scalar_lea.vmem %s275_s17, 128 }
  0x16   : > { %351 = vmatprep.subr.mxu0 %v462_v2  ;;  %s165_s5 = scalar_lea.vmem %s587_s0, %s338_s29  ;;  %p400_p11 = scmp.ne.s32.totalorder %s275_s17, %s399_s26 }
  0x17   : > { %352 = vmatpush3.msra.mxu0 %v167_v3  ;;  %v166_v4 = vld [vmem:[%s165_s5] sm:$0xff]  ;;  %s403_s27 = sshll.u32 %s464_s16, 4  ;;  %s404_s27 = int_to_ptr.vmem [resolvable:$false] %s403_s27 }
  0x18   : > { %172 = vperm.xlu0 %398, %v166_v4   ;;  %p401_p12 = pnand %p400_p11, %p523_p5  ;;  %s405_s28 = scalar_lea.vmem %s404_s27, 256 }
  0x19   : > { %p406_p0 = scmp.lt.s32.totalorder %s275_s17, %s404_s27  ;;  %p407_p1 = scmp.lt.s32.totalorder %s405_s28, %s399_s26 }
  0x1a   : > { %p402_p13 = pneg %p401_p12 }
  0x1b   : > { %p408_p2 = por %p407_p1, %p406_p0 }
  0x1d   : > { %p409_p3 = pnand %p408_p2, %p402_p13 }
  0x93   : > { %v173_v7 = vpop.permute.xlu0 %172 }
  0x94   : > { %vm174_vm2 = vcmp.eq.s32.totalorder %v170_v6, %v173_v7 }
  0x95   : > { %v339_v8 = vsel %vm174_vm2, 1.0, %v462_v2 }
  0x96   : > { %354 = vmatmul.mubr.msk.f32.vlgmr.msra.gmra.mxu0 %vm184_vm1, %v339_v8 }
 0x156   : > { %v254_v10 = vpop.f32.mrf.mxu0 }
 0x157   : > { %v255_v11 = vadd.f32 %v340_v9, %v254_v10 }
 0x158   : > { %v355_v12 = vpop.f32.mrf.mxu0 }
 0x159   : > { %259 = vst.msk [vmem:[%s161_s11] sm:$0xff] %vm258_vm3, %v255_v11 }
 0x15a   : > { %412 = shalt.err (!%p409_p3)
}
 0x15b   : > { %s413_s29 = scalar_lea.hbm %s552_s24, 128  ;;  %s417_s5 = scalar_lea.hbm %s590_s3, 256 }
 0x15c   : > { %p414_p4 = scmp.ne.s32.totalorder %s552_s24, %s413_s29  ;;  %p418_p9 = scmp.lt.s32.totalorder %s552_s24, %s590_s3 }
 0x15d   : > { %p419_p10 = scmp.lt.s32.totalorder %s417_s5, %s413_s29 }
 0x15e   : > { %p415_p7 = pnand %p414_p4, %p523_p5 }
 0x15f   : > { %p420_p11 = por %p419_p10, %p418_p9 }
 0x160   : > { %p416_p8 = pneg %p415_p7 }
 0x162   : > { %p421_p12 = pnand %p420_p11, %p416_p8 }
 0x164   : > { %424 = shalt.err (!%p421_p12)
}
 0x165   : > { %356 = dma.vmem_to_hbm [thread:$0]  (%p523_p5), %s275_s17, 128, %s552_s24, %s261_s25  }
 0x166 PF: > { %p362_p13 = scmp.ge.s32.totalorder %s459_s15, 2  ;;  %s286_s8 = sand.u32 1, %s447_s12  }
 0x167   : > { %s287_s9 = scalar_lea.sflag [#allocation3], %s286_s8 }
 0x168   : > { %p359_p0 = pnand %p362_p13, %p527_p6 }
 0x16a   : > { %p360_p1 = pneg %p359_p0 }
 0x16c   : > { %442 = dma.done.wait (%p360_p1), %s287_s9, 128  }
 0x16d   : > { %444 = vsyncadd (%p360_p1), %s287_s9, 4294967168  ;;  %p13_p2 = scmp.ge.s32.totalorder %s510_s18, 4   ;;  %s593_s12 = smov %s451_s13 }
 0x16e   : > { %s594_s13 = smov %s455_s14  ;;  %s595_s14 = smov %s521_s21 }
 0x16f   : > { %s596_s15 = smov %s510_s18  ;;  %15 = sbr.rel (!%p13_p2) target bundleno = 3 (0x3), region = 67 }
 0x174   :  { %292 = vsyncpa [#allocation3], 1 }
 0x175   :  { %294 = vsyncpa [#allocation3 + $0x1], 1 }

</bundles_post_ra>
